<compile_context>
chip_gen: v7x
topology: tpu7x:2x2x1
jax: 0.10.0
libtpu: 0.0.40
codegen_flags: <defaults>
</compile_context>

<pallas_src>
import functools

import jax
import jax.numpy as jnp
from jax.experimental import pallas as pl
from jax.experimental.pallas import tpu as pltpu


def _head_kernel(x_ref, w_ref, b_ref, o_ref, *, seed_end, reg_end, training, grouped):
    """One (batch, HW-tile) step: 1x1 conv (matmul) + per-group activation.

    x_ref : (Cin, THW)   input feature tile (lane axis = flattened H*W)
    w_ref : (Cout, Cin)  conv weight (1x1 kernel squeezed)
    b_ref : (Cout, 1)    conv bias
    o_ref : (Cout, THW)  conv output with activations applied per channel group
    """
    x = x_ref[...]
    w = w_ref[...]
    b = b_ref[...]
    acc = jnp.dot(w, x, preferred_element_type=jnp.float32) + b   # (Cout, THW) on MXU

    if training:
        # Training mode: no activation inside forward (matches the PyTorch module).
        o_ref[...] = acc.astype(o_ref.dtype)
        return

    cout = o_ref.shape[0]

    def _sigmoid(v):
        # sigmoid(v) == 0.5 * tanh(0.5 * v) + 0.5  -> one EUP op instead of exp + recip.
        return 0.5 * jnp.tanh(0.5 * v) + 0.5

    if grouped:
        # Sublane-aligned, non-degenerate groups: three unmasked grouped stores.
        if seed_end > 0:
            o_ref[:seed_end, :] = _sigmoid(acc[:seed_end]).astype(o_ref.dtype)
        if reg_end > seed_end:
            o_ref[seed_end:reg_end, :] = acc[seed_end:reg_end].astype(o_ref.dtype)
        if cout > reg_end:
            o_ref[reg_end:, :] = jnp.tanh(acc[reg_end:]).astype(o_ref.dtype)
    else:
        # Fallback (misaligned or degenerate groups): single full-width select store.
        row = jax.lax.broadcasted_iota(jnp.int32, acc.shape, 0)
        out = jnp.where(row < seed_end, _sigmoid(acc),
                        jnp.where(row < reg_end, acc, jnp.tanh(acc)))
        o_ref[...] = out.astype(o_ref.dtype)


def _tile_params(hw, cin, cout, in_bytes, out_bytes, w_bytes, batch):
    """Pick the HW tile (multiple of 128 lanes) and a scoped-VMEM limit per chip gen."""
    try:
        vmem_cap = int(pltpu.get_tpu_info().vmem_capacity_bytes)
    except Exception:  # unknown environment -> assume smallest (v7x per-TC: 64 MiB)
        vmem_cap = 64 << 20
    # In+out bytes per grid step: big enough to amortize the ~0.35us/step overhead,
    # small enough that double-buffering stays comfortably inside v7x's 64 MiB VMEM.
    step_budget = min(16 << 20, vmem_cap // 8)
    per_col = cin * in_bytes + cout * out_bytes
    max_cols = max(128, (step_budget // per_col) // 128 * 128)
    hw_up = pl.cdiv(hw, 128) * 128
    thw = min(hw_up, max_cols)
    # Guarantee >= 2 grid steps so both TensorCores get work on v7x (harmless elsewhere).
    if batch * pl.cdiv(hw, thw) < 2 and hw_up > 128:
        thw = pl.cdiv(pl.cdiv(hw_up, 2), 128) * 128
    n_tiles = pl.cdiv(hw, thw)
    # Scoped-VMEM limit: double-buffered in/out tiles + resident weight/bias + slack.
    required = 2 * thw * per_col + 2 * cout * cin * w_bytes + 2 * cout * 128 * 4
    vmem_limit = int(min(max(required + (4 << 20), 32 << 20),
                         max(vmem_cap - (16 << 20), 32 << 20)))
    return thw, n_tiles, vmem_limit


def instance_seg_head_forward(x, weight, bias, *, n_fields, n_confidences=1,
                              n_vectors=1, n_sigmas=2, training=False,
                              compute_dtype=None):
    """Forward pass of InstanceSegHead (quad=1, kernel_size=1, dropout p=0.0)."""
    # TODO(synk): only the module's default kernel_size=1 conv is implemented
    # (a general KxK conv has no clean single-matmul Pallas form here).
    B, Cin, H, W = x.shape
    of0 = n_confidences * n_fields
    of1 = of0 + n_vectors * 2 * n_fields
    of2 = of1 + n_sigmas * n_fields
    cout = of2 * 4  # quad == 1 -> 4 ** 1
    assert weight.shape == (cout, Cin), (weight.shape, (cout, Cin))
    assert bias.shape == (cout,), bias.shape

    if compute_dtype is not None:   # optional bf16 data path (halves HBM traffic)
        x = x.astype(compute_dtype)
        weight = weight.astype(compute_dtype)
    out_dtype = x.dtype

    hw = H * W
    x2 = x.reshape(B, Cin, hw)      # layout-free reshape (no data movement)

    thw, n_tiles, vmem_limit = _tile_params(
        hw, Cin, cout, x.dtype.itemsize, jnp.dtype(out_dtype).itemsize,
        weight.dtype.itemsize, B)

    # Conv channel k maps to post-PixelShuffle channel k // 4, so the activation-group
    # boundaries on conv channels are simply 4 * out_features[i].
    seed_end, reg_end = of0 * 4, of1 * 4
    sublane = max(1, 32 // jnp.dtype(out_dtype).itemsize)
    grouped = (0 < seed_end < reg_end < cout
               and seed_end % sublane == 0 and reg_end % sublane == 0)

    kernel = functools.partial(_head_kernel, seed_end=seed_end, reg_end=reg_end,
                               training=training, grouped=grouped)

    y = pl.pallas_call(
        kernel,
        out_shape=jax.ShapeDtypeStruct((B, cout, hw), out_dtype),
        grid=(B, n_tiles),
        in_specs=[
            pl.BlockSpec((None, Cin, thw), lambda i, t: (i, 0, t)),
            pl.BlockSpec((cout, Cin), lambda i, t: (0, 0)),
            pl.BlockSpec((cout, 1), lambda i, t: (0, 0)),
        ],
        out_specs=pl.BlockSpec((None, cout, thw), lambda i, t: (i, 0, t)),
        compiler_params=pltpu.CompilerParams(
            dimension_semantics=("parallel", "parallel"),
            vmem_limit_bytes=vmem_limit),
    )(x2, weight, bias.reshape(cout, 1))

    # ---- layout-only tail (XLA): PixelShuffle(2), crop, split, view ----
    r, C = 2, of2
    y = y.reshape(B, C, H, W * 0 + W) if False else y.reshape(B, cout, H, W)
    y = y.reshape(B, C, r, r, H, W).transpose(0, 1, 4, 2, 5, 3).reshape(B, C, H * r, W * r)
    y = y[:, :, :-1, :-1]
    H2, W2 = y.shape[2], y.shape[3]

    seed_x = y[:, :of0].reshape(B, n_fields, n_confidences, H2, W2)
    regs_x = y[:, of0:of1].reshape(B, n_fields, n_vectors, 2, H2, W2)
    sigma_x = y[:, of1:of2].reshape(B, n_fields, n_sigmas, H2, W2)
    return seed_x, regs_x, sigma_x


def _reference_forward(x, weight, bias, *, n_fields, n_confidences=1,
                       n_vectors=1, n_sigmas=2, training=False):
    """Pure-JAX reference replicating the PyTorch forward (eval mode by default)."""
    B, Cin, H, W = x.shape
    of0 = n_confidences * n_fields
    of1 = of0 + n_vectors * 2 * n_fields
    of2 = of1 + n_sigmas * n_fields

    y = jnp.einsum("oc,bchw->bohw", weight, x,
                   precision=jax.lax.Precision.HIGHEST) + bias[None, :, None, None]
    r, C = 2, of2
    y = y.reshape(B, C, r, r, H, W).transpose(0, 1, 4, 2, 5, 3).reshape(B, C, H * r, W * r)
    y = y[:, :, :-1, :-1]
    H2, W2 = y.shape[2], y.shape[3]

    seed_x = y[:, :of0].reshape(B, n_fields, n_confidences, H2, W2)
    regs_x = y[:, of0:of1].reshape(B, n_fields, n_vectors, 2, H2, W2)
    sigma_x = y[:, of1:of2].reshape(B, n_fields, n_sigmas, H2, W2)
    if not training:
        seed_x = jax.nn.sigmoid(seed_x)
        sigma_x = jnp.tanh(sigma_x)
    return seed_x, regs_x, sigma_x


if __name__ == "__main__":
    key = jax.random.PRNGKey(0)
    kx, kw, kb = jax.random.split(key, 3)

    # Small shapes consistent with the module: batch=2, in_features=32, 16x16 feature map,
    # meta with 4 objects (n_fields=4), defaults n_confidences=1, n_vectors=1, n_sigmas=2.
    B, Cin, H, W = 2, 32, 16, 16
    n_fields, n_conf, n_vec, n_sig = 4, 1, 1, 2
    of0 = n_conf * n_fields
    of1 = of0 + n_vec * 2 * n_fields
    of2 = of1 + n_sig * n_fields
    Cout = of2 * 4  # = 80 conv output channels (before PixelShuffle)

    x = jax.random.normal(kx, (B, Cin, H, W), dtype=jnp.float32)
    weight = jax.random.normal(kw, (Cout, Cin), dtype=jnp.float32) * 0.1
    bias = jax.random.normal(kb, (Cout,), dtype=jnp.float32) * 0.1

    seed_x, regs_x, sigma_x = instance_seg_head_forward(
        x, weight, bias, n_fields=n_fields, n_confidences=n_conf,
        n_vectors=n_vec, n_sigmas=n_sig, training=False)
    jax.block_until_ready(seed_x)
    jax.block_until_ready(regs_x)
    jax.block_until_ready(sigma_x)

    seed_r, regs_r, sigma_r = _reference_forward(
        x, weight, bias, n_fields=n_fields, n_confidences=n_conf,
        n_vectors=n_vec, n_sigmas=n_sig, training=False)

    H2, W2 = 2 * H - 1, 2 * W - 1
    assert seed_x.shape == (B, n_fields, n_conf, H2, W2), seed_x.shape
    assert regs_x.shape == (B, n_fields, n_vec, 2, H2, W2), regs_x.shape
    assert sigma_x.shape == (B, n_fields, n_sig, H2, W2), sigma_x.shape

    assert jnp.allclose(seed_x, seed_r, atol=1e-3, rtol=1e-3)
    assert jnp.allclose(regs_x, regs_r, atol=1e-3, rtol=1e-3)
    assert jnp.allclose(sigma_x, sigma_r, atol=1e-3, rtol=1e-3)

    print("KERNEL_OK")
</pallas_src>

<mosaic_0001>
module attributes {stable_mosaic.version = 11 : i64} {
  func.func @_head_kernel(%arg0: i32, %arg1: i32, %arg2: memref<1x32x256xf32, #tpu.memory_space<vmem>>, %arg3: memref<80x32xf32, #tpu.memory_space<vmem>>, %arg4: memref<80x1xf32, #tpu.memory_space<vmem>>, %arg5: memref<1x80x256xf32, #tpu.memory_space<vmem>>) attributes {dimension_semantics = [#tpu.dimension_semantics<parallel>, #tpu.dimension_semantics<parallel>], iteration_bounds = array<i64: 2, 1>, scalar_prefetch = 0 : i64, scratch_operands = 0 : i64, tpu.core_type = #tpu.core_type<tc>, window_params = [{transform_indices = @transform_0, window_bounds = array<i64: 1, 32, 256>}, {pipeline_mode = #tpu.pipeline_mode<synchronous>, transform_indices = @transform_1, window_bounds = array<i64: 80, 32>}, {pipeline_mode = #tpu.pipeline_mode<synchronous>, transform_indices = @transform_2, window_bounds = array<i64: 80, 1>}, {transform_indices = @transform_3, window_bounds = array<i64: 1, 80, 256>}]} {
    %c0 = arith.constant 0 : index
    %c0_0 = arith.constant 0 : index
    %c0_1 = arith.constant 0 : index
    %0 = vector.load %arg2[%c0, %c0_0, %c0_1] : memref<1x32x256xf32, #tpu.memory_space<vmem>>, vector<1x32x256xf32>
    %1 = vector.shape_cast %0 : vector<1x32x256xf32> to vector<32x256xf32>
    %c0_2 = arith.constant 0 : index
    %c0_3 = arith.constant 0 : index
    %2 = vector.load %arg3[%c0_2, %c0_3] : memref<80x32xf32, #tpu.memory_space<vmem>>, vector<80x32xf32>
    %c0_4 = arith.constant 0 : index
    %c0_5 = arith.constant 0 : index
    %3 = vector.load %arg4[%c0_4, %c0_5] : memref<80x1xf32, #tpu.memory_space<vmem>>, vector<80x1xf32>
    %cst = arith.constant dense<0.000000e+00> : vector<80x256xf32>
    %4 = tpu.matmul %2, %1, %cst {dimension_numbers = #tpu.dot_dimension_numbers<[1], [0], [0], [1], [0, 0, 1, 1], [], []>} : vector<80x32xf32>, vector<32x256xf32>, vector<80x256xf32> -> vector<80x256xf32>
    %5 = vector.broadcast %3 : vector<80x1xf32> to vector<80x256xf32>
    %6 = arith.addf %4, %5 : vector<80x256xf32>
    %7 = vector.extract_strided_slice %6 {offsets = [0, 0], sizes = [16, 256], strides = [1, 1]} : vector<80x256xf32> to vector<16x256xf32>
    %cst_6 = arith.constant 5.000000e-01 : f32
    %8 = vector.broadcast %cst_6 : f32 to vector<16x256xf32>
    %9 = arith.mulf %8, %7 : vector<16x256xf32>
    %10 = math.tanh %9 : vector<16x256xf32>
    %cst_7 = arith.constant 5.000000e-01 : f32
    %11 = vector.broadcast %cst_7 : f32 to vector<16x256xf32>
    %12 = arith.mulf %11, %10 : vector<16x256xf32>
    %cst_8 = arith.constant 5.000000e-01 : f32
    %13 = vector.broadcast %cst_8 : f32 to vector<16x256xf32>
    %14 = arith.addf %12, %13 : vector<16x256xf32>
    %c0_9 = arith.constant 0 : index
    %c0_10 = arith.constant 0 : index
    %c0_11 = arith.constant 0 : index
    %15 = vector.load %arg5[%c0_9, %c0_10, %c0_11] : memref<1x80x256xf32, #tpu.memory_space<vmem>>, vector<1x16x256xf32>
    %16 = vector.shape_cast %15 : vector<1x16x256xf32> to vector<16x256xf32>
    %17 = vector.shape_cast %14 : vector<16x256xf32> to vector<1x16x256xf32>
    tpu.vector_store %arg5[%c0_9, %c0_10, %c0_11], %17 {strides = array<i32>} : memref<1x80x256xf32, #tpu.memory_space<vmem>>, vector<1x16x256xf32>,
    %18 = vector.extract_strided_slice %6 {offsets = [16, 0], sizes = [32, 256], strides = [1, 1]} : vector<80x256xf32> to vector<32x256xf32>
    %c0_12 = arith.constant 0 : index
    %c16 = arith.constant 16 : index
    %c0_13 = arith.constant 0 : index
    %19 = vector.load %arg5[%c0_12, %c16, %c0_13] : memref<1x80x256xf32, #tpu.memory_space<vmem>>, vector<1x32x256xf32>
    %20 = vector.shape_cast %19 : vector<1x32x256xf32> to vector<32x256xf32>
    %21 = vector.shape_cast %18 : vector<32x256xf32> to vector<1x32x256xf32>
    tpu.vector_store %arg5[%c0_12, %c16, %c0_13], %21 {strides = array<i32>} : memref<1x80x256xf32, #tpu.memory_space<vmem>>, vector<1x32x256xf32>,
    %22 = vector.extract_strided_slice %6 {offsets = [48, 0], sizes = [32, 256], strides = [1, 1]} : vector<80x256xf32> to vector<32x256xf32>
    %23 = math.tanh %22 : vector<32x256xf32>
    %c0_14 = arith.constant 0 : index
    %c48 = arith.constant 48 : index
    %c0_15 = arith.constant 0 : index
    %24 = vector.load %arg5[%c0_14, %c48, %c0_15] : memref<1x80x256xf32, #tpu.memory_space<vmem>>, vector<1x32x256xf32>
    %25 = vector.shape_cast %24 : vector<1x32x256xf32> to vector<32x256xf32>
    %26 = vector.shape_cast %23 : vector<32x256xf32> to vector<1x32x256xf32>
    tpu.vector_store %arg5[%c0_14, %c48, %c0_15], %26 {strides = array<i32>} : memref<1x80x256xf32, #tpu.memory_space<vmem>>, vector<1x32x256xf32>,
    return
  }
  func.func @transform_0(%arg0: i32, %arg1: i32) -> (i32, i32, i32) {
    %c0_i32 = arith.constant 0 : i32
    %c0_i32_0 = arith.constant 0 : i32
    return %arg0, %c0_i32, %arg1 : i32, i32, i32
  }
  func.func @transform_1(%arg0: i32, %arg1: i32) -> (i32, i32) {
    %c0_i32 = arith.constant 0 : i32
    %c0_i32_0 = arith.constant 0 : i32
    %c0_i32_1 = arith.constant 0 : i32
    return %c0_i32, %c0_i32_0 : i32, i32
  }
  func.func @transform_2(%arg0: i32, %arg1: i32) -> (i32, i32) {
    %c0_i32 = arith.constant 0 : i32
    %c0_i32_0 = arith.constant 0 : i32
    %c0_i32_1 = arith.constant 0 : i32
    return %c0_i32, %c0_i32_0 : i32, i32
  }
  func.func @transform_3(%arg0: i32, %arg1: i32) -> (i32, i32, i32) {
    %c0_i32 = arith.constant 0 : i32
    %c0_i32_0 = arith.constant 0 : i32
    return %arg0, %c0_i32, %arg1 : i32, i32, i32
  }
}

</mosaic_0001>

<bundles_post_ra>
// kernel: tpu_custom_call.1
= control target key start
LH: loop header
LB: loop body
LE: loop exit
PB: predicated region body
PF: predicated region fallthrough
CT: control target
= control target key end

     0   :  { %8 = vsyncpa [#allocation3], 0  ;;  %s1024_s0 = inlined_call_operand.vmem [shape: f32[2,32,256], index: 0, kind: input, shape index: {}]   ;;  %s1025_s1 = inlined_call_operand.vmem [shape: f32[80,32], index: 1, kind: input, shape index: {}]   ;;  %s1026_s2 = inlined_call_operand.vmem [shape: f32[80,1], index: 2, kind: input, shape index: {}]   ;;  %s1027_s3 = inlined_call_operand.hbm [shape: f32[2,80,256], index: 3, kind: output, shape index: {}]  }
   0x1   :  { %10 = vsyncpa [#allocation3 + $0x1], 0  ;;  %s798_s12 = smov 0   ;;  %s800_s13 = smov 0  }
   0x2   :  { %s802_s14 = smov 0   ;;  %s804_s15 = smov 0  }
   0x3   :  { %s806_s16 = smov 0   ;;  %s808_s17 = smov 0  }
   0x4 LB: > { %s573_s18 = sadd.s32 4294967295, %s771_s17   ;;  %s574_s19 = sadd.s32 4294967294, %s771_s17   ;;  %s771_s17 = sphi %s808_s17, %s16_s17   ;;  %s767_s16 = sphi %s806_s16, %s1034_s16   ;;  %s763_s15 = sphi %s804_s15, %s1033_s15   ;;  %s759_s14 = sphi %s802_s14, %s1032_s14   ;;  %s755_s13 = sphi %s800_s13, %s1031_s13   ;;  %s751_s12 = sphi %s798_s12, %s1030_s12  }
   0x5   : > { %s28_s20 = sadd.s32 1, %s767_s16  ;;  %s107_s21 = sadd.s32 1, %s759_s14 }
   0x6   : > { %p30_p0 = scmp.ge.s32.totalorder %s28_s20, 2  ;;  %p117_p1 = scmp.ne.s32.totalorder %s759_s14, %s755_s13 }
   0x7   : > { %p118_p2 = scmp.eq.s32.totalorder %s573_s18, 1  ;;  %p123_p3 = scmp.ne.s32.totalorder %s755_s13, %s751_s12 }
   0x8   : > { %s1036_s20 = smov (%p30_p0, %s28_s20), 0  ;;  %p124_p5 = scmp.eq.s32.totalorder %s574_s19, 1 }
   0x9   : > { %p838_p4 = por %p118_p2, %p117_p1  ;;  %s102_s23 = ssub.s32 %s767_s16, %s1036_s20 }
   0xa   : > { %p577_p6 = scmp.ge.s32.totalorder %s771_s17, 1  ;;  %p105_p7 = scmp.eq.s32.totalorder %s102_s23, 0 }
   0xb   : > { %p845_p8 = por %p124_p5, %p123_p3  ;;  %p161_p9 = scmp.lt.s32.totalorder %s771_s17, 3 }
   0xc   : > { %s851_s25 = scalar_select %p105_p7, %s759_s14, %s107_s21  }
   0xd   : > { %p162_p10 = pnand %p577_p6, %p161_p9 }
   0xe   : > { %p190_p11 = scmp.lt.s32.totalorder (!%p162_p10), %s763_s15, 1  ;;  %v773_v0 = vmov (!%p162_p10), 0.0   ;;  %v774_v1 = vmov (!%p162_p10), 0   ;;  %v224_v2 = vld [vmem:[%s1026_s2 + $0x30] sm:$0xff] (!%p162_p10)  ;;  %v218_v3 = vld [vmem:[%s1026_s2] sm:$0xff] (!%p162_p10)  ;;  %v225_v4 = vld [vmem:[%s1026_s2 + $0x38] sm:$0xff] (!%p162_p10) }
   0xf   : > { %165 = sbr.rel (%p162_p10) target bundleno = 295 (0x127), region = 32  ;;  %373 = vmatprep.mubr.f32.mxu0 (!%p162_p10), %v773_v0  ;;  %403 = vmatprep.mubr.f32.mxu1 (!%p162_p10), %v773_v0  ;;  %v227_v16 = vld [vmem:[%s1026_s2 + $0x48] sm:$0xff] (!%p162_p10)  ;;  %v221_v19 = vld [vmem:[%s1026_s2 + $0x18] sm:$0xff] (!%p162_p10)  ;;  %v226_v20 = vld [vmem:[%s1026_s2 + $0x40] sm:$0xff] (!%p162_p10)  ;;  %vm278_vm0 = vcmask (!%p162_p10), 261120   ;;  %s186_s10 = sand.u32 (!%p162_p10), 1, %s755_s13  }
  0x10   : > { %668 = vset.pattern.permute.xlu1 (!%p162_p10), %v774_v1  ;;  %667 = vset.pattern.permute.xlu0 (!%p162_p10), %v774_v1  ;;  %v219_v17 = vld [vmem:[%s1026_s2 + $0x8] sm:$0xff] (!%p162_p10)  ;;  %v208_v21 = vld [vmem:[%s1025_s1] sm:$0xff] (!%p162_p10)  ;;  %v220_v24 = vld [vmem:[%s1026_s2 + $0x10] sm:$0xff] (!%p162_p10)  ;;  %s606_s11 = smul.u32 (!%p162_p10), 160, %s186_s10 }
  0x11   : > { %260 = vperm.xlu1 (!%p162_p10), %668, %v224_v2   ;;  %230 = vperm.xlu0 (!%p162_p10), %667, %v218_v3   ;;  %v213_v22 = vld [vmem:[%s1025_s1 + $0x28] sm:$0xff] (!%p162_p10)  ;;  %v214_v26 = vld [vmem:[%s1025_s1 + $0x30] sm:$0xff] (!%p162_p10)  ;;  %v222_v27 = vld [vmem:[%s1026_s2 + $0x20] sm:$0xff] (!%p162_p10)  ;;  %s607_s19 = smul.u32 (!%p162_p10), 2560, %s763_s15 }
  0x12   : > { %v223_v23 = vld [vmem:[%s1026_s2 + $0x28] sm:$0xff] (!%p162_p10)  ;;  %v210_v28 = vld [vmem:[%s1025_s1 + $0x10] sm:$0xff] (!%p162_p10)  ;;  %v215_v29 = vld [vmem:[%s1025_s1 + $0x38] sm:$0xff] (!%p162_p10)  ;;  %s943_s18 = scalar_lea.vmem (!%p162_p10), [#allocation2], %s606_s11 }
  0x13   : > { %v209_v25 = vld [vmem:[%s1025_s1 + $0x8] sm:$0xff] (!%p162_p10)  ;;  %v211_v30 = vld [vmem:[%s1025_s1 + $0x18] sm:$0xff] (!%p162_p10)  ;;  %v216_v31 = vld [vmem:[%s1025_s1 + $0x40] sm:$0xff] (!%p162_p10)  ;;  %s494_s21 = sshll.u32 (!%p162_p10), %s943_s18, 4  ;;  %s970_s27 = scalar_lea.hbm (!%p162_p10), %s1027_s3, %s607_s19  ;;  %s972_s21 = int_to_ptr.vmem [resolvable:$true] %s494_s21 }
  0x14   : > { %v212_v32 = vld [vmem:[%s1025_s1 + $0x20] sm:$0xff] (!%p162_p10)  ;;  %v217_v33 = vld [vmem:[%s1025_s1 + $0x48] sm:$0xff] (!%p162_p10)  ;;  %s693_s28 = scalar_lea.vmem (!%p162_p10), %s972_s21, 2560 }
  0x15   : > { %265 = vperm.xlu1 (!%p162_p10), %668, %v225_v4   ;;  %235 = vperm.xlu0 (!%p162_p10), %667, %v219_v17   ;;  %p694_p12 = scmp.ne.s32.totalorder (!%p162_p10), %s972_s21, %s693_s28 }
  0x16   : > { %s191_s26 = scalar_select %p190_p11, %s763_s15, 1 }
  0x17   : > { %s978_s15 = scalar_lea.sflag [#allocation3], %s186_s10  ;;  %p695_p13 = pnand %p694_p12, %p838_p4 }
  0x18   : > { %s593_s29 = sshll.u32 %s191_s26, 6 }
  0x19   : > { %s197_s7 = scalar_lea.vmem %s1024_s0, %s593_s29  ;;  %275 = vperm.xlu1 %668, %v227_v16   ;;  %270 = vperm.xlu0 %667, %v226_v20   ;;  %p696_p0 = pneg %p695_p13 }
  0x1a   : > { %v201_v5 = vld [vmem:[%s197_s7 + $0x8] sm:$0xff]  ;;  %v203_v6 = vld [vmem:[%s197_s7 + $0x18] sm:$0xff]  ;;  %v200_v7 = vld [vmem:[%s197_s7] sm:$0xff]  ;;  %s775_s29 = smov [#allocation2]  }
  0x1b   : > { %v594_v8 = vpack.c.bf16 %v203_v6, %v201_v5  ;;  %v202_v9 = vld [vmem:[%s197_s7 + $0x10] sm:$0xff]  ;;  %v205_v10 = vld [vmem:[%s197_s7 + $0x28] sm:$0xff]  ;;  %v207_v11 = vld [vmem:[%s197_s7 + $0x38] sm:$0xff]  ;;  %s697_s30 = sshll.u32 %s775_s29, 4  ;;  %s698_s30 = int_to_ptr.vmem [resolvable:$false] %s697_s30 }
  0x1c   : > { %v596_v12 = vpack.c.bf16 %v202_v9, %v200_v7  ;;  %v598_v13 = vpack.c.bf16 %v207_v11, %v205_v10  ;;  %v204_v14 = vld [vmem:[%s197_s7 + $0x20] sm:$0xff]  ;;  %v206_v15 = vld [vmem:[%s197_s7 + $0x30] sm:$0xff]  ;;  %s699_s4 = scalar_lea.vmem %s698_s30, 5120  ;;  %p700_p1 = scmp.lt.s32.totalorder %s972_s21, %s698_s30 }
  0x1d   : > { %595 = vmatprep.subr.bf16.mxu0 %v594_v8  ;;  %602 = vmatprep.subr.bf16.mxu1 %v594_v8  ;;  %v600_v18 = vpack.c.bf16 %v206_v15, %v204_v14  ;;  %p701_p2 = scmp.lt.s32.totalorder %s699_s4, %s693_s28 }
  0x1e   : > { %597 = vmatpush1.bf16.msra.mxu0 %v596_v12  ;;  %604 = vmatpush1.bf16.msra.mxu1 %v596_v12 }
  0x1f   : > { %599 = vmatprep.subr.bf16.mxu0 %v598_v13  ;;  %603 = vmatprep.subr.bf16.mxu1 %v598_v13  ;;  %p702_p3 = por %p701_p2, %p700_p1 }
  0x20   : > { %245 = vperm.xlu1 %668, %v221_v19   ;;  %240 = vperm.xlu0 %667, %v220_v24  }
  0x21   : > { %p703_p5 = pnand %p702_p3, %p696_p0 }
  0x22   : > { %601 = vmatpush1.bf16.msra.mxu0 %v600_v18  ;;  %605 = vmatpush1.bf16.msra.mxu1 %v600_v18 }
  0x24   : > { %255 = vperm.xlu1 %668, %v223_v23   ;;  %250 = vperm.xlu0 %667, %v222_v27  }
  0x25   : > { %580 = vmatmul.mubr.msk.f32.vlgmr.msra.gmra.mrb[0].mxu0 %vm278_vm0, %v208_v21  ;;  %585 = vmatmul.mubr.msk.f32.vlgmr.msra.gmra.mrb[0].mxu1 %vm278_vm0, %v213_v22 }
  0x26   : > { %379 = vmatprep.mubr.f32.mxu0 %v773_v0  ;;  %409 = vmatprep.mubr.f32.mxu1 %v773_v0 }
  0x29   : > { %581 = vmatmul.mubr.msk.f32.gmra.mrb[2].mxu0 %vm278_vm0, %v209_v25  ;;  %586 = vmatmul.mubr.msk.f32.gmra.mrb[2].mxu1 %vm278_vm0, %v214_v26 }
  0x2a   : > { %385 = vmatprep.mubr.f32.mxu0 %v773_v0  ;;  %415 = vmatprep.mubr.f32.mxu1 %v773_v0 }
  0x2d   : > { %582 = vmatmul.mubr.msk.f32.gmra.mrb[4].mxu0 %vm278_vm0, %v210_v28  ;;  %587 = vmatmul.mubr.msk.f32.gmra.mrb[4].mxu1 %vm278_vm0, %v215_v29 }
  0x2e   : > { %391 = vmatprep.mubr.f32.mxu0 %v773_v0  ;;  %421 = vmatprep.mubr.f32.mxu1 %v773_v0 }
  0x31   : > { %583 = vmatmul.mubr.msk.f32.gmra.mrb[6].mxu0 %vm278_vm0, %v211_v30  ;;  %588 = vmatmul.mubr.msk.f32.gmra.mrb[6].mxu1 %vm278_vm0, %v216_v31 }
  0x32   : > { %397 = vmatprep.mubr.f32.mxu0 %v773_v0  ;;  %427 = vmatprep.mubr.f32.mxu1 %v773_v0 }
  0x35   : > { %584 = vmatmul.mubr.msk.f32.gmra.mrb[8].mxu0 %vm278_vm0, %v212_v32  ;;  %589 = vmatmul.mubr.msk.f32.gmra.mrb[8].mxu1 %vm278_vm0, %v217_v33 }
  0x90   : > { %v261_v34 = vpop.permute.xlu1 %260  ;;  %v231_v37 = vpop.permute.xlu0 %230 }
  0x94   : > { %v266_v35 = vpop.permute.xlu1 %265  ;;  %v236_v39 = vpop.permute.xlu0 %235 }
  0x98   : > { %v938_v36 = vpop.permute.xlu1 %275  ;;  %v271_v41 = vpop.permute.xlu0 %270 }
  0x9f   : > { %v246_v38 = vpop.permute.xlu1 %245  ;;  %v241_v60 = vpop.permute.xlu0 %240 }
  0xa3   : > { %v256_v40 = vpop.permute.xlu1 %255  ;;  %v251_v16 = vpop.permute.xlu0 %250 }
  0xf8   : > { %v405_v42 = vpop.f32.mrb[0].mxu1  ;;  %v375_v43 = vpop.f32.mrb[0].mxu0 }
  0xf9   : > { %v406_v44 = vadd.f32 %v405_v42, %v256_v40  ;;  %v407_v45 = vpop.f32.mrb[1].mxu1  ;;  %v376_v46 = vadd.f32 %v375_v43, %v231_v37  ;;  %v377_v47 = vpop.f32.mrb[1].mxu0 }
  0xfa   : > { %v408_v48 = vadd.f32 %v407_v45, %v256_v40  ;;  %v378_v49 = vadd.f32 %v377_v47, %v231_v37 }
  0xfb   : > { %460 = vst [vmem:[%s943_s18 + $0x50] sm:$0xff] %v406_v44  ;;  %v434_v50 = vmul.f32 0.5, %v376_v46 }
  0xfc   : > { %461 = vst [vmem:[%s943_s18 + $0x58] sm:$0xff] %v408_v48  ;;  %v411_v51 = vpop.f32.mrb[2].mxu1  ;;  %v435_v52 = vmul.f32 0.5, %v378_v49  ;;  %v381_v53 = vpop.f32.mrb[2].mxu0 }
  0xfd   : > { %669 = vtanh.f32 %v434_v50  ;;  %v412_v54 = vadd.f32 %v411_v51, %v261_v34  ;;  %v413_v55 = vpop.f32.mrb[3].mxu1  ;;  %v382_v56 = vadd.f32 %v381_v53, %v236_v39  ;;  %v383_v57 = vpop.f32.mrb[3].mxu0 }
  0xfe   : > { %671 = vtanh.f32 %v435_v52  ;;  %v414_v58 = vadd.f32 %v413_v55, %v261_v34  ;;  %v384_v59 = vadd.f32 %v383_v57, %v236_v39 }
  0xff   : > { %673 = vtanh.f32 %v412_v54  ;;  %v436_v61 = vmul.f32 0.5, %v382_v56 }
 0x100   : > { %675 = vtanh.f32 %v414_v58  ;;  %v437_v62 = vmul.f32 0.5, %v384_v59  ;;  %v387_v63 = vpop.f32.mrb[4].mxu0  ;;  %v417_v0 = vpop.f32.mrb[4].mxu1 }
 0x101   : > { %677 = vtanh.f32 %v436_v61  ;;  %v388_v1 = vadd.f32 %v387_v63, %v241_v60  ;;  %v418_v2 = vadd.f32 %v417_v0, %v266_v35  ;;  %v389_v3 = vpop.f32.mrb[5].mxu0  ;;  %v419_v4 = vpop.f32.mrb[5].mxu1 }
 0x102   : > { %679 = vtanh.f32 %v437_v62  ;;  %v390_v5 = vadd.f32 %v389_v3, %v241_v60  ;;  %v420_v6 = vadd.f32 %v419_v4, %v266_v35 }
 0x103   : > { %454 = vst [vmem:[%s943_s18 + $0x20] sm:$0xff] %v388_v1  ;;  %681 = vtanh.f32 %v418_v2 }
 0x104   : > { %455 = vst [vmem:[%s943_s18 + $0x28] sm:$0xff] %v390_v5  ;;  %683 = vtanh.f32 %v420_v6  ;;  %v393_v7 = vpop.f32.mrb[6].mxu0  ;;  %v423_v8 = vpop.f32.mrb[6].mxu1 }
 0x105   : > { %v394_v9 = vadd.f32 %v393_v7, %v246_v38  ;;  %v424_v10 = vadd.f32 %v423_v8, %v271_v41  ;;  %v395_v11 = vpop.f32.mrb[7].mxu0  ;;  %v425_v12 = vpop.f32.mrb[7].mxu1 }
 0x106   : > { %v396_v13 = vadd.f32 %v395_v11, %v246_v38  ;;  %v426_v14 = vadd.f32 %v425_v12, %v271_v41 }
 0x107   : > { %v670_v15 = vpop.eup %669  ;;  %456 = vst [vmem:[%s943_s18 + $0x30] sm:$0xff] %v394_v9  ;;  %685 = vtanh.f32 %v424_v10 }
 0x108   : > { %v672_v17 = vpop.eup %671  ;;  %v442_v18 = vmul.f32 0.5, %v670_v15  ;;  %457 = vst [vmem:[%s943_s18 + $0x38] sm:$0xff] %v396_v13  ;;  %687 = vtanh.f32 %v426_v14  ;;  %v399_v19 = vpop.f32.mrb[8].mxu0 }
 0x109   : > { %v429_v20 = vpop.f32.mrb[8].mxu1  ;;  %v674_v21 = vpop.eup %673  ;;  %v443_v22 = vmul.f32 0.5, %v672_v17  ;;  %v400_v23 = vadd.f32 %v399_v19, %v251_v16 }
 0x10a   : > { %v430_v24 = vadd.f32 %v429_v20, %v938_v36  ;;  %v401_v25 = vpop.f32.mrb[9].mxu0  ;;  %v431_v26 = vpop.f32.mrb[9].mxu1  ;;  %v446_v28 = vadd.f32 0.5, %v442_v18  ;;  %470 = vst [vmem:[%s943_s18 + $0x60] sm:$0xff] %v674_v21 }
 0x10b   : > { %v676_v27 = vpop.eup %675  ;;  %v402_v29 = vadd.f32 %v401_v25, %v251_v16  ;;  %v432_v30 = vadd.f32 %v431_v26, %v938_v36  ;;  %v447_v32 = vadd.f32 0.5, %v443_v22  ;;  %458 = vst [vmem:[%s943_s18 + $0x40] sm:$0xff] %v400_v23 }
 0x10c   : > { %v678_v31 = vpop.eup %677  ;;  %471 = vst [vmem:[%s943_s18 + $0x68] sm:$0xff] %v676_v27  ;;  %689 = vtanh.f32 %v430_v24  ;;  %450 = vst [vmem:[%s943_s18] sm:$0xff] %v446_v28 }
 0x10d   : > { %v680_v33 = vpop.eup %679  ;;  %v444_v34 = vmul.f32 0.5, %v678_v31  ;;  %459 = vst [vmem:[%s943_s18 + $0x48] sm:$0xff] %v402_v29  ;;  %691 = vtanh.f32 %v432_v30  ;;  %451 = vst [vmem:[%s943_s18 + $0x8] sm:$0xff] %v447_v32 }
 0x10e   : > { %v682_v35 = vpop.eup %681  ;;  %v445_v36 = vmul.f32 0.5, %v680_v33 }
 0x10f   : > { %v684_v37 = vpop.eup %683  ;;  %v448_v38 = vadd.f32 0.5, %v444_v34  ;;  %472 = vst [vmem:[%s943_s18 + $0x70] sm:$0xff] %v682_v35 }
 0x110   : > { %v449_v39 = vadd.f32 0.5, %v445_v36  ;;  %473 = vst [vmem:[%s943_s18 + $0x78] sm:$0xff] %v684_v37 }
 0x111   : > { %452 = vst [vmem:[%s943_s18 + $0x10] sm:$0xff] %v448_v38  ;;  %v686_v40 = vpop.eup %685 }
 0x112   : > { %453 = vst [vmem:[%s943_s18 + $0x18] sm:$0xff] %v449_v39  ;;  %v688_v41 = vpop.eup %687  ;;  %474 = vst [vmem:[%s943_s18 + $0x80] sm:$0xff] %v686_v40 }
 0x113   : > { %475 = vst [vmem:[%s943_s18 + $0x88] sm:$0xff] %v688_v41 }
 0x116   : > { %v690_v42 = vpop.eup %689 }
 0x117   : > { %v692_v43 = vpop.eup %691  ;;  %476 = vst [vmem:[%s943_s18 + $0x90] sm:$0xff] %v690_v42 }
 0x118   : > { %477 = vst [vmem:[%s943_s18 + $0x98] sm:$0xff] %v692_v43 }
 0x119   : > { %706 = shalt.err (!%p703_p5)
}
 0x11a   : > { %s707_s5 = scalar_lea.hbm %s970_s27, 2560  ;;  %s711_s8 = scalar_lea.hbm %s1027_s3, 5120 }
 0x11b   : > { %p708_p6 = scmp.ne.s32.totalorder %s970_s27, %s707_s5  ;;  %p712_p10 = scmp.lt.u32.totalorder %s970_s27, %s1027_s3 }
 0x11c   : > { %p713_p11 = scmp.lt.u32.totalorder %s711_s8, %s707_s5  ;;  %p715_p13 = scmp.lt.u32.totalorder %s707_s5, %s970_s27 }
 0x11d   : > { %p709_p7 = pnand %p708_p6, %p838_p4 }
 0x11e   : > { %p714_p12 = por %p713_p11, %p712_p10 }
 0x11f   : > { %p710_p9 = pneg %p709_p7 }
 0x120   : > { %p716_p0 = por %p715_p13, %p714_p12 }
 0x122   : > { %p717_p1 = pnand %p716_p0, %p710_p9 }
 0x124   : > { %720 = shalt.err (!%p717_p1)
}
 0x125   : > { %s776_s11 = smov 256   ;;  %s777_s18 = smov 16  }
 0x126   : > { %608 = dma.vmem_to_hbm [thread:$0]  (%p838_p4), %s972_s21, 2560, %s970_s27, %s978_s15, %s776_s11, %s776_s11, %s777_s18  }
 0x127 PF: > { %p614_p2 = scmp.ge.s32.totalorder %s771_s17, 2  ;;  %s509_s19 = sand.u32 1, %s751_s12  }
 0x128   : > { %s510_s23 = scalar_lea.sflag [#allocation3], %s509_s19 }
 0x129   : > { %p611_p3 = pnand %p614_p2, %p845_p8 }
 0x12b   : > { %746 = dma.done.wait (!%p611_p3), %s510_s23, 2560  }
 0x12c   : > { %748 = vsyncadd (!%p611_p3), %s510_s23, 4294964736  ;;  %s16_s17 = sadd.s32 1, %s771_s17   ;;  %s1030_s12 = smov %s755_s13 }
 0x12d   : > { %p13_p5 = scmp.ge.s32.totalorder %s16_s17, 4   ;;  %s1031_s13 = smov %s759_s14 }
 0x12e   : > { %s1032_s14 = smov %s851_s25  ;;  %s1033_s15 = smov %s767_s16 }
 0x12f   : > { %s1034_s16 = smov %s1036_s20  ;;  %15 = sbr.rel (!%p13_p5) target bundleno = 4 (0x4), region = 67 }
 0x136   :  { %515 = vsyncpa [#allocation3], 1 }
 0x137   :  { %517 = vsyncpa [#allocation3 + $0x1], 1 }

</bundles_post_ra>
